<compile_context>
chip_gen: v7x
topology: tpu7x:2x2x1
jax: 0.10.0
libtpu: 0.0.40
codegen_flags: <defaults>
</compile_context>

<pallas_src>
import functools

import jax
import jax.numpy as jnp
from jax.experimental import pallas as pl
from jax.experimental.pallas import tpu as pltpu


def _cdiv(a, b):
    return -(-a // b)


def _round_up(a, b):
    return _cdiv(a, b) * b


@functools.lru_cache(maxsize=None)
def _pltpu_roll_is_numpy_convention():
    """True iff pltpu.roll(x, +1, axis=0)[i] == x[i-1] (jnp.roll semantics).

    Tiny one-off probe so the tap/weight assignment stays correct across JAX
    versions; the result only flips which static shift gives the left/right tap.
    """
    def k(x_ref, o_ref):
        o_ref[...] = pltpu.roll(x_ref[...], 1, axis=0)

    x = jnp.broadcast_to(jnp.arange(8, dtype=jnp.float32)[:, None], (8, 128))
    y = pl.pallas_call(k, out_shape=jax.ShapeDtypeStruct((8, 128), jnp.float32))(x)
    return bool(y[1, 0] == 0.0)


def _vmem_capacity_bytes():
    try:
        info = pltpu.get_tpu_info()
        cap = int(getattr(info, "vmem_capacity_bytes", 0) or 0)
        if cap > 0:
            return cap
    except Exception:
        pass
    return 64 * 1024 * 1024      # conservative fallback: v7x per-TensorCore VMEM


def _vmem_budget():
    return (3 * _vmem_capacity_bytes()) // 4      # ~48 MiB v7x, ~96 MiB v5e/v6e


# ----------------------------------------------------------------------------
# Fused Pallas kernel: all layers of one stage (3x3 conv -> scale/bias -> ReLU?)
# ----------------------------------------------------------------------------
def _dncnn_stage_kernel(x_ref, w0_ref, wr_ref, s_ref, b_ref, wmask_ref,
                        vmask_ref, o_ref, *,
                        W, TH, n_layers, F, C_IN, C_OUT, relu_flags, ROLL_FWD):
    """All n_layers conv layers of a stage for one (batch, row-strip) tile.

    x_ref:     (1, 1, R_in*W, C_IN)          bf16  strip incl. n_layers-row halo/side
    w0_ref:    (3*C_IN, 3*G0)                bf16  layer-0 weights, dx in K, dy in N
    wr_ref:    (max(n_layers-1,1), 3F, 3F)   bf16  layer 1.. weights (dy in N)
    s_ref:     (n_layers, F)                 f32   folded-BN scale
    b_ref:     (n_layers, F)                 f32   folded-BN bias
    wmask_ref: (2, R_in*W, 1)                bf16  left / right column-wrap masks
    vmask_ref: (1, R_in*W, 1)                f32   1 on in-image pixels, 0 on padding
    o_ref:     (1, TH*W, C_OUT)                    output strip
    """
    R_in = TH + 2 * n_layers

    act = x_ref[0, 0]                      # (R_in*W, C_IN) bf16
    mask_l = wmask_ref[0]                  # zero where image col == 0
    mask_r = wmask_ref[1]                  # zero where image col == W-1
    vmask = vmask_ref[0]                   # zero outside the real image

    for l in range(n_layers):              # statically unrolled layer loop
        npix = (R_in - 2 * l) * W          # pixels in this layer's input
        npix_out = npix - 2 * W            # valid conv: one halo row each side
        G = C_OUT if l == n_layers - 1 else F   # dy-group width of the output

        # dx taps via XLU sublane rolls + wrap masks, fused into K = 3*cin.
        if ROLL_FWD:
            s_left, s_right = 1, npix - 1
        else:
            s_left, s_right = npix - 1, 1
        xm1 = pltpu.roll(act, s_left, axis=0) * mask_l[:npix]    # x[.., w-1, :]
        xp1 = pltpu.roll(act, s_right, axis=0) * mask_r[:npix]   # x[.., w+1, :]
        a_w = jnp.concatenate([xm1, act, xp1], axis=1)           # (npix, 3*cin)

        # Single MXU matmul per layer: K = 3*cin, N = 3*G (dy taps along N).
        if l == 0:
            wmat = w0_ref[...]                                   # (3*C_IN, 3*G)
        else:
            wmat = wr_ref[l - 1][:, :3 * G]                      # (3F, 3*G)
        big = jnp.dot(a_w, wmat, preferred_element_type=jnp.float32)  # (npix, 3G)

        # Combine the three dy taps: row shift dy*W (sublane aligned because
        # W % 8 == 0), column group dy*G.
        acc = (big[0 * W:0 * W + npix_out, 0 * G:1 * G]
               + big[1 * W:1 * W + npix_out, 1 * G:2 * G]
               + big[2 * W:2 * W + npix_out, 2 * G:3 * G])

        # Folded-BN scale/bias (+ optional ReLU) epilogue in f32.
        y = acc * s_ref[l:l + 1, :G] + b_ref[l:l + 1, :G]
        if relu_flags[l]:
            y = jnp.maximum(y, 0.0)

        if l < n_layers - 1:
            # Re-impose the zero padding outside the real image so the next
            # conv layer sees zeros there, then carry the activation in bf16.
            y = y * vmask[(l + 1) * W:(l + 1) * W + npix_out]
            act = y.astype(jnp.bfloat16)
        else:
            o_ref[0] = y.astype(o_ref.dtype)                     # (TH*W, C_OUT)


# ----------------------------------------------------------------------------
# Parameter packing (per stage)
# ----------------------------------------------------------------------------
def _pack_stage_params(stage_params, c_in_pad, F, c_out_pad):
    n = len(stage_params)
    g0 = F if n > 1 else c_out_pad

    def pack(w, cin_pad, g):
        # w: (3=ky, 3=kx, cin, cout) -> (3*cin_pad, 3*g) with
        # K index = kx*cin_pad + ci  (matches concat([x(w-1), x(w), x(w+1)]))
        # N index = ky*g + f         (dy taps packed along N)
        _, _, cin, cout = w.shape
        wp = jnp.zeros((3, 3, cin_pad, g), jnp.float32)
        wp = wp.at[:, :, :cin, :cout].set(w.astype(jnp.float32))
        return jnp.transpose(wp, (1, 2, 0, 3)).reshape(3 * cin_pad, 3 * g)

    w0 = pack(stage_params[0]["w"], c_in_pad, g0).astype(jnp.bfloat16)

    if n > 1:
        wrs = []
        for idx in range(1, n):
            g = c_out_pad if idx == n - 1 else F
            wk = pack(stage_params[idx]["w"], F, g)
            full = jnp.zeros((3 * F, 3 * F), jnp.float32).at[:, :3 * g].set(wk)
            wrs.append(full)
        wr = jnp.stack(wrs).astype(jnp.bfloat16)            # (n-1, 3F, 3F)
    else:
        wr = jnp.zeros((1, 3 * F, 3 * F), jnp.bfloat16)     # dummy, never read

    def pad_vec(v, fill):
        v = v.astype(jnp.float32)
        if v.shape[0] < F:
            v = jnp.concatenate([v, jnp.full((F - v.shape[0],), fill, jnp.float32)])
        return v

    smat = jnp.stack([pad_vec(p["scale"], 1.0) for p in stage_params])   # (n, F)
    bmat = jnp.stack([pad_vec(p["bias"], 0.0) for p in stage_params])    # (n, F)
    return w0, wr, smat, bmat


# ----------------------------------------------------------------------------
# Strip-height picker with explicit VMEM accounting
# ----------------------------------------------------------------------------
def _pick_tile_rows(H, W_pad, n_layers, F, *, c_in_pad, c_out_pad, out_bytes,
                    budget):
    """Largest strip height whose per-strip VMEM working set fits `budget`.

    Counts: double-buffered input strip and output block, double-buffered
    weights / masks, and the per-layer in-kernel temporaries (bf16 act + rolls
    + K=3F concat, f32 (npix, 3F) matmul output, f32 accumulator), with 25%
    slack for compiler relayout copies.
    """
    work_px = 12 * F + 16 * F                    # bf16 act/rolls/a_w + f32 big/acc
    in_px = 2 * c_in_pad * 2                     # 2x-buffered bf16 input strip
    out_px = 2 * c_out_pad * out_bytes           # 2x-buffered output block
    mask_px = 2 * (2 * 2 + 4)                    # 2x-buffered wmask(bf16) + vmask(f32)
    per_row = int(W_pad * (work_px + in_px + out_px + mask_px) * 1.25)
    weights = 2 * (max(n_layers - 1, 1) * 9 * F * F * 2
                   + 3 * c_in_pad * 3 * F * 2 + 8 * n_layers * F)
    avail = max(budget - weights, per_row * (2 * n_layers + 1))
    r_in = avail // max(per_row, 1)
    return int(max(1, min(r_in - 2 * n_layers, H)))


# ----------------------------------------------------------------------------
# One fused stage (wrapper around pallas_call)
# ----------------------------------------------------------------------------
def _run_stage(x_nhwc, stage_params, *, F, c_out_pad, out_dtype, tile_rows=None):
    N, H, W, C = x_nhwc.shape
    n = len(stage_params)
    c_in_pad = _round_up(C, 8)
    W_pad = _round_up(W, 8)       # sublane alignment for dy slices / strip blocks

    if tile_rows is None:
        tile_rows = _pick_tile_rows(
            H, W_pad, n, F, c_in_pad=c_in_pad, c_out_pad=c_out_pad,
            out_bytes=jnp.dtype(out_dtype).itemsize, budget=_vmem_budget())
    TH = max(1, min(int(tile_rows), H))
    H_t = _round_up(H, TH)
    S = H_t // TH                 # number of row strips
    R_in = TH + 2 * n             # strip rows incl. halo
    PIX = R_in * W_pad

    # Single zero pad for the whole stage: n halo rows top/bottom (+ tail pad),
    # width pad to a multiple of 8, channel pad to c_in_pad.  Carried in bf16.
    xb = x_nhwc.astype(jnp.bfloat16)
    xp = jnp.pad(xb, ((0, 0), (n, n + H_t - H), (0, W_pad - W), (0, c_in_pad - C)))
    rows = (jnp.arange(S) * TH)[:, None] + jnp.arange(R_in)[None, :]
    x_strips = xp[:, rows].reshape(N, S, PIX, c_in_pad)

    w0, wr, smat, bmat = _pack_stage_params(stage_params, c_in_pad, F, c_out_pad)

    # Precomputed masks (hoisted out of the kernel).
    p = jnp.arange(PIX)
    col = p % W_pad
    wmask = jnp.stack([col != 0, col != W_pad - 1]).astype(jnp.bfloat16)
    wmask = wmask.reshape(2, PIX, 1)
    img_row = (jnp.arange(S) * TH)[:, None] + (p // W_pad)[None, :] - n
    vmask = ((img_row >= 0) & (img_row < H) & (col < W)[None, :])
    vmask = vmask.astype(jnp.float32).reshape(S, PIX, 1)

    relu_flags = tuple(bool(lp["relu"]) for lp in stage_params)
    kernel = functools.partial(
        _dncnn_stage_kernel, W=W_pad, TH=TH, n_layers=n, F=F,
        C_IN=c_in_pad, C_OUT=c_out_pad, relu_flags=relu_flags,
        ROLL_FWD=_pltpu_roll_is_numpy_convention())

    vmem_cap = _vmem_capacity_bytes()
    out = pl.pallas_call(
        kernel,
        out_shape=jax.ShapeDtypeStruct((N, H_t * W_pad, c_out_pad), out_dtype),
        grid=(N, S),
        in_specs=[
            pl.BlockSpec((1, 1, PIX, c_in_pad), lambda b, i: (b, i, 0, 0)),
            pl.BlockSpec(tuple(w0.shape), lambda b, i: (0, 0)),
            pl.BlockSpec(tuple(wr.shape), lambda b, i: (0, 0, 0)),
            pl.BlockSpec(tuple(smat.shape), lambda b, i: (0, 0)),
            pl.BlockSpec(tuple(bmat.shape), lambda b, i: (0, 0)),
            pl.BlockSpec((2, PIX, 1), lambda b, i: (0, 0, 0)),
            pl.BlockSpec((1, PIX, 1), lambda b, i: (i, 0, 0)),
        ],
        out_specs=pl.BlockSpec((1, TH * W_pad, c_out_pad), lambda b, i: (b, i, 0)),
        compiler_params=pltpu.CompilerParams(
            # Both axes parallel -> megacore / v7x 2-TC sharding of (N, S).
            dimension_semantics=("parallel", "parallel"),
            vmem_limit_bytes=int(vmem_cap * 0.9),
        ),
    )(x_strips, w0, wr, smat, bmat, wmask, vmask)

    out = out.reshape(N, H_t, W_pad, c_out_pad)[:, :H, :W, :]
    return out


# ----------------------------------------------------------------------------
# Full DnCNN forward (NCHW in / NCHW out)
# ----------------------------------------------------------------------------
def dncnn_forward(x_nchw, params, *, tile_rows=None, layers_per_call=None):
    assert len(params) >= 2
    N, C, H, W = x_nchw.shape
    L = len(params)
    F = params[0]["w"].shape[-1]
    x = jnp.transpose(x_nchw, (0, 2, 3, 1))       # NCHW -> NHWC

    if layers_per_call is None:
        layers_per_call = L
        budget = _vmem_budget()
        W_pad = _round_up(W, 8)
        # Auto depth-split: if one fused call over all layers cannot get a
        # usable strip height (halo 2L rows), chain several fused calls with a
        # bf16 HBM hand-off in between (each with a smaller halo).
        while layers_per_call > 2:
            th = _pick_tile_rows(H, W_pad, layers_per_call, F,
                                 c_in_pad=F, c_out_pad=F, out_bytes=2,
                                 budget=budget)
            if th >= min(H, max(8, layers_per_call)):
                break
            layers_per_call = max(2, (layers_per_call + 1) // 2)
    layers_per_call = max(1, min(int(layers_per_call), L))
    stages = [params[i:i + layers_per_call] for i in range(0, L, layers_per_call)]

    act = x
    for si, sp in enumerate(stages):
        is_last = si == len(stages) - 1
        c_out = sp[-1]["w"].shape[-1]
        c_out_pad = _round_up(c_out, 8)
        out_dtype = jnp.float32 if is_last else jnp.bfloat16
        act = _run_stage(act, sp, F=F, c_out_pad=c_out_pad,
                         out_dtype=out_dtype, tile_rows=tile_rows)

    out = act[..., :C]
    return jnp.transpose(out, (0, 3, 1, 2)).astype(x_nchw.dtype)


# ----------------------------------------------------------------------------
# DnCNN parameter construction (deterministic, synthetic; eval-mode BN folded)
# ----------------------------------------------------------------------------
def init_dncnn_params(key, channels=3, num_of_layers=17, features=64):
    """Returns a list of per-layer dicts: {'w', 'scale', 'bias', 'relu'}."""
    params = []
    eps = 1e-5

    def conv_w(k, cin, cout):
        fan_in = 9 * cin
        std = (2.0 / fan_in) ** 0.5
        return std * jax.random.normal(k, (3, 3, cin, cout), jnp.float32)

    keys = jax.random.split(key, num_of_layers * 5)
    ki = 0

    # Layer 0: conv(channels -> features) + ReLU   (no BN)
    params.append(dict(
        w=conv_w(keys[ki], channels, features),
        scale=jnp.ones((features,), jnp.float32),
        bias=jnp.zeros((features,), jnp.float32),
        relu=True,
    ))
    ki += 1

    # Middle layers: conv(features->features) + BN(eval, folded) + ReLU
    for _ in range(num_of_layers - 2):
        w = conv_w(keys[ki], features, features); ki += 1
        gamma = 1.0 + 0.1 * jax.random.normal(keys[ki], (features,), jnp.float32); ki += 1
        beta = 0.1 * jax.random.normal(keys[ki], (features,), jnp.float32); ki += 1
        run_mean = 0.05 * jax.random.normal(keys[ki], (features,), jnp.float32); ki += 1
        run_var = 1.0 + 0.1 * jax.random.uniform(keys[ki], (features,), jnp.float32); ki += 1
        inv_std = 1.0 / jnp.sqrt(run_var + eps)
        params.append(dict(
            w=w,
            scale=gamma * inv_std,
            bias=beta - gamma * run_mean * inv_std,
            relu=True,
        ))

    # Last layer: conv(features -> channels), no BN, no ReLU
    params.append(dict(
        w=conv_w(keys[ki], features, channels),
        scale=jnp.ones((channels,), jnp.float32),
        bias=jnp.zeros((channels,), jnp.float32),
        relu=False,
    ))
    return params


# ----------------------------------------------------------------------------
# Pure-JAX reference (mirrors the kernel's bf16 weights / activations)
# ----------------------------------------------------------------------------
def dncnn_reference(x_nchw, params):
    x = jnp.transpose(x_nchw, (0, 2, 3, 1))
    act = x.astype(jnp.bfloat16)
    out = None
    for idx, layer in enumerate(params):
        w = layer["w"].astype(jnp.bfloat16)
        y = jax.lax.conv_general_dilated(
            act, w, window_strides=(1, 1), padding="SAME",
            dimension_numbers=("NHWC", "HWIO", "NHWC"),
            preferred_element_type=jnp.float32)
        y = y * layer["scale"] + layer["bias"]
        if layer["relu"]:
            y = jnp.maximum(y, 0.0)
        if idx < len(params) - 1:
            act = y.astype(jnp.bfloat16)
        else:
            out = y
    return jnp.transpose(out, (0, 3, 1, 2)).astype(x_nchw.dtype)


if __name__ == "__main__":
    key = jax.random.PRNGKey(0)
    k_x, k_p = jax.random.split(key)

    # Small shapes consistent with the module: batch=2, channels=3, 16x16.
    channels, num_of_layers, features = 3, 5, 64
    H = W = 16
    x = jax.random.normal(k_x, (2, channels, H, W), jnp.float32)   # NCHW

    params = init_dncnn_params(k_p, channels=channels,
                               num_of_layers=num_of_layers, features=features)

    ref = jax.block_until_ready(dncnn_reference(x, params))

    # bf16 activations/weights through 5 layers -> allow a few bf16 ulps of
    # drift vs the (also-bf16) conv reference; structural bugs would be O(1).
    rtol = atol = 5e-2

    # (a) Single fused call; tile_rows=8 -> two row strips, exercising the
    #     halo / spatial-tiling path in addition to the fused-layer path.
    out1 = jax.block_until_ready(dncnn_forward(x, params, tile_rows=8))
    assert out1.shape == x.shape, (out1.shape, x.shape)
    d1 = float(jnp.max(jnp.abs(out1 - ref)))
    assert jnp.allclose(out1, ref, rtol=rtol, atol=atol), ("fused max abs diff", d1)

    # (b) Depth-split path (two chained fused calls with a bf16 HBM hand-off),
    #     the fallback used when a single call cannot fit VMEM at HDR sizes.
    out2 = jax.block_until_ready(
        dncnn_forward(x, params, tile_rows=8, layers_per_call=3))
    assert out2.shape == x.shape, (out2.shape, x.shape)
    d2 = float(jnp.max(jnp.abs(out2 - ref)))
    assert jnp.allclose(out2, ref, rtol=rtol, atol=atol), ("split max abs diff", d2)

    print("KERNEL_OK")
</pallas_src>

<mosaic_0001>
module attributes {stable_mosaic.version = 11 : i64} {
  func.func @k(%arg0: memref<8x128xf32, #tpu.memory_space<vmem>>, %arg1: memref<8x128xf32, #tpu.memory_space<vmem>>) attributes {dimension_semantics = [], scalar_prefetch = 0 : i64, scratch_operands = 0 : i64, tpu.core_type = #tpu.core_type<tc>} {
    %c0 = arith.constant 0 : index
    %c0_0 = arith.constant 0 : index
    %0 = vector.load %arg0[%c0, %c0_0] : memref<8x128xf32, #tpu.memory_space<vmem>>, vector<8x128xf32>
    %c1_i32 = arith.constant 1 : i32
    %1 = tpu.dynamic_rotate %0 by %c1_i32 dim 0 : vector<8x128xf32>, i32 -> vector<8x128xf32>
    %c0_1 = arith.constant 0 : index
    %c0_2 = arith.constant 0 : index
    %2 = vector.load %arg1[%c0_1, %c0_2] : memref<8x128xf32, #tpu.memory_space<vmem>>, vector<8x128xf32>
    tpu.vector_store %arg1[%c0_1, %c0_2], %1 {strides = array<i32>} : memref<8x128xf32, #tpu.memory_space<vmem>>, vector<8x128xf32>,
    return
  }
}

</mosaic_0001>

<bundles_post_ra>
// kernel: tpu_custom_call.1
= control target key start
LH: loop header
LB: loop body
LE: loop exit
PB: predicated region body
PF: predicated region fallthrough
CT: control target
= control target key end

     0   :  { %6 = vsyncpa [#allocation3], 0  ;;  %s125_s0 = inlined_call_operand.hbm [shape: f32[8,128], index: 0, kind: input, shape index: {}]   ;;  %s126_s1 = inlined_call_operand.hbm [shape: f32[8,128], index: 1, kind: output, shape index: {}]  }
   0x1   :  { %7 = vsyncpa [#allocation4], 0  ;;  %s89_s6 = smov [#allocation2]   ;;  %s41_s10 = scalar_lea.hbm %s125_s0, 128 }
   0x2   :  { %s14_s7 = sshll.u32 %s89_s6, 4  ;;  %p42_p0 = scmp.ne.s32.totalorder %s125_s0, %s41_s10  ;;  %s15_s7 = int_to_ptr.vmem [resolvable:$true] %s14_s7 }
   0x3   :  { %p45_p1 = scmp.lt.u32.totalorder %s41_s10, %s125_s0 }
   0x5   :  { %p47_p2 = pnand %p45_p1, %p42_p0 }
   0x7   :  { %50 = shalt.err (!%p47_p2)
}
   0x8   :  { %s51_s15 = scalar_lea.vmem %s15_s7, 128  ;;  %p56_p4 = scmp.lt.s32.totalorder %s15_s7, %s15_s7 }
   0x9   :  { %p52_p3 = scmp.ne.s32.totalorder %s15_s7, %s51_s15  ;;  %p57_p5 = scmp.lt.s32.totalorder %s51_s15, %s51_s15 }
   0xb   :  { %p58_p6 = por %p57_p5, %p56_p4 }
   0xd   :  { %p59_p7 = pnand %p58_p6, %p52_p3 }
   0xf   :  { %62 = shalt.err (!%p59_p7)
}
  0x10   :  { %17 = dma.hbm_to_vmem [thread:$0]  %s125_s0, 128, %s15_s7, [#allocation3]  }
  0x11   :  { %85 = dma.done.wait [#allocation3], 128  }
  0x12   :  { %86 = vsyncadd [#allocation3], 4294967168  ;;  %s90_s18 = smov [#allocation5]   ;;  %v21_v0 = vld [vmem:[#allocation2] sm:$0xff] }
  0x13   :  { %s30_s19 = sshll.u32 %s90_s18, 4  ;;  %v22_v1 = vrot.slane %v21_v0, 7  ;;  %s31_s19 = int_to_ptr.vmem [resolvable:$true] %s30_s19 }
  0x14   :  { %s63_s20 = scalar_lea.vmem %s31_s19, 128  ;;  %p68_p9 = scmp.lt.s32.totalorder %s31_s19, %s31_s19 }
  0x15   :  { %23 = vst [vmem:[#allocation5] sm:$0xff] %v22_v1  ;;  %p64_p8 = scmp.ne.s32.totalorder %s31_s19, %s63_s20  ;;  %p69_p10 = scmp.lt.s32.totalorder %s63_s20, %s63_s20 }
  0x17   :  { %p70_p11 = por %p69_p10, %p68_p9 }
  0x19   :  { %p71_p12 = pnand %p70_p11, %p64_p8 }
  0x1b   :  { %74 = shalt.err (!%p71_p12)
}
  0x1c   :  { %s75_s23 = scalar_lea.hbm %s126_s1, 128 }
  0x1d   :  { %p76_p13 = scmp.ne.s32.totalorder %s126_s1, %s75_s23  ;;  %p79_p0 = scmp.lt.u32.totalorder %s75_s23, %s126_s1 }
  0x1f   :  { %p81_p1 = pnand %p79_p0, %p76_p13 }
  0x21   :  { %84 = shalt.err (!%p81_p1)
}
  0x22   :  { %33 = dma.vmem_to_hbm [thread:$0]  %s31_s19, 128, %s126_s1, [#allocation4]  }
  0x23   :  { %87 = dma.done.wait [#allocation4], 128  }
  0x24   :  { %88 = vsyncadd [#allocation4], 4294967168 }
  0x25   :  { %37 = vsyncpa [#allocation3], 1 }
  0x26   :  { %38 = vsyncpa [#allocation4], 1 }

</bundles_post_ra>
